<compile_context>
chip_gen: v7x
topology: tpu7x:2x2x1
jax: 0.10.0
libtpu: 0.0.40
codegen_flags: <defaults>
</compile_context>

<pallas_src>
import jax
import jax.numpy as jnp
from jax.experimental import pallas as pl
from jax.experimental.pallas import tpu as pltpu


def lstm_seq_kernel(ids_ref,                                    # (T, B) int32, SMEM (scalar prefetch)
                    embed_ref, h0_ref, c0_ref,                  # (V,H), (L,B,H), (L,B,H)
                    wx_ref, wh_ref, b_ref,                      # (L,H,4H), (L,H,4H), (L,1,4H)
                    wfc_ref, bfc_ref,                           # (H,O), (1,O)
                    out_ref, h_out_ref, c_out_ref,              # (1,B,O), (L,B,H), (L,B,H)
                    h_scr, c_scr):                              # VMEM scratch (L,B,H) f32
    """One recurrent timestep per grid step; h/c carried in VMEM scratch."""
    t = pl.program_id(0)
    T = pl.num_programs(0)
    L, B, H = h_scr.shape
    V = embed_ref.shape[0]

    # ---- load initial state into the carried scratch on the first step ----
    @pl.when(t == 0)
    def _():
        h_scr[...] = h0_ref[...].astype(jnp.float32)
        c_scr[...] = c0_ref[...].astype(jnp.float32)

    # ---- embedding gather as one-hot @ table (MXU), ids read from SMEM ----
    sub = jax.lax.broadcasted_iota(jnp.int32, (B, V), 0)        # row (batch) index
    vcol = jax.lax.broadcasted_iota(jnp.int32, (B, V), 1)       # column (vocab) index
    ids_mat = jnp.full((B, V), ids_ref[t, 0], dtype=jnp.int32)
    for b in range(1, B):                                       # B static -> unrolled selects
        ids_mat = jnp.where(sub == b, ids_ref[t, b], ids_mat)
    one_hot = (vcol == ids_mat).astype(jnp.float32)             # OOB id -> all-zero row (safe)
    x = jnp.dot(one_hot, embed_ref[...],
                preferred_element_type=jnp.float32)             # (B, H)

    # ---- gate nonlinearity masks (hoisted out of the layer loop) ----
    lane = jax.lax.broadcasted_iota(jnp.int32, (B, 4 * H), 1)
    is_g = (lane >= 2 * H) & (lane < 3 * H)                     # gate order [i, f, g, o]
    pre_scale = jnp.where(is_g, 1.0, 0.5)                       # tanh(z) vs tanh(z/2)
    post_bias = jnp.where(is_g, 0.0, 0.5)                       # sigmoid = 0.5*tanh(z/2)+0.5

    # ---- stacked LSTM cell, L is static -> fully unrolled ----
    for layer in range(L):
        h = h_scr[layer]
        c = c_scr[layer]
        gates = (jnp.dot(x, wx_ref[layer], preferred_element_type=jnp.float32)
                 + jnp.dot(h, wh_ref[layer], preferred_element_type=jnp.float32)
                 + b_ref[layer])                                # (B, 4H)
        th = jnp.tanh(gates * pre_scale)                        # single EUP pass
        act = th * pre_scale + post_bias                        # [sig, sig, tanh, sig]

        i_g = act[:, 0 * H:1 * H]
        f_g = act[:, 1 * H:2 * H]
        g_g = act[:, 2 * H:3 * H]
        o_g = act[:, 3 * H:4 * H]

        c_new = f_g * c + i_g * g_g
        h_new = o_g * jnp.tanh(c_new)

        h_scr[layer] = h_new
        c_scr[layer] = c_new
        x = h_new                                               # input to next layer

    # ---- per-step logits into the (T, B, O) slab ----
    out_ref[0] = (jnp.dot(x, wfc_ref[...], preferred_element_type=jnp.float32)
                  + bfc_ref[...]).astype(out_ref.dtype)

    # ---- final h/c written once, on the last timestep only ----
    @pl.when(t == T - 1)
    def _():
        h_out_ref[...] = h_scr[...].astype(h_out_ref.dtype)
        c_out_ref[...] = c_scr[...].astype(c_out_ref.dtype)


def lstm_forward_sequence(ids_tb, hidden, cell, params):
    """Run T recurrent steps in ONE pallas_call.

    ids_tb: (T, B) int32 token ids.  Returns ((T,B,O) logits, (h, c))."""
    T, B = ids_tb.shape
    L, _, H = hidden.shape
    V = params["embed"].shape[0]
    O = params["fc_b_row"].shape[1]

    flops = T * (2 * B * V * H + L * 2 * (2 * B * H * 4 * H) + 2 * B * H * O)
    transcendentals = T * L * (B * 4 * H + B * H)
    bytes_accessed = int(
        ids_tb.size * 4
        + params["embed"].size * 4 + hidden.size * 4 + cell.size * 4
        + params["w_x"].size * 4 + params["w_h"].size * 4 + params["b"].size * 4
        + params["fc_w_t"].size * 4 + params["fc_b_row"].size * 4
        + (T * B * O + 2 * L * B * H) * 4)

    const3 = lambda t, ids: (0, 0, 0)     # weights / state stay VMEM-resident
    const2 = lambda t, ids: (0, 0)

    grid_spec = pltpu.PrefetchScalarGridSpec(
        num_scalar_prefetch=1,
        grid=(T,),
        in_specs=[
            pl.BlockSpec((V, H), const2),            # embed
            pl.BlockSpec((L, B, H), const3),         # h0
            pl.BlockSpec((L, B, H), const3),         # c0
            pl.BlockSpec((L, H, 4 * H), const3),     # w_x
            pl.BlockSpec((L, H, 4 * H), const3),     # w_h
            pl.BlockSpec((L, 1, 4 * H), const3),     # b
            pl.BlockSpec((H, O), const2),            # fc_w_t
            pl.BlockSpec((1, O), const2),            # fc_b_row
        ],
        out_specs=(
            pl.BlockSpec((1, B, O), lambda t, ids: (t, 0, 0)),   # per-step logits slab
            pl.BlockSpec((L, B, H), const3),                     # final h
            pl.BlockSpec((L, B, H), const3),                     # final c
        ),
        scratch_shapes=[pltpu.VMEM((L, B, H), jnp.float32),
                        pltpu.VMEM((L, B, H), jnp.float32)],
    )

    logits, h_new, c_new = pl.pallas_call(
        lstm_seq_kernel,
        out_shape=(
            jax.ShapeDtypeStruct((T, B, O), jnp.float32),
            jax.ShapeDtypeStruct((L, B, H), jnp.float32),
            jax.ShapeDtypeStruct((L, B, H), jnp.float32),
        ),
        grid_spec=grid_spec,
        compiler_params=pltpu.CompilerParams(
            dimension_semantics=("arbitrary",)),     # recurrent axis is sequential
        cost_estimate=pl.CostEstimate(flops=flops,
                                      transcendentals=transcendentals,
                                      bytes_accessed=bytes_accessed),
    )(ids_tb, params["embed"], hidden, cell,
      params["w_x"], params["w_h"], params["b"],
      params["fc_w_t"], params["fc_b_row"])
    return logits, (h_new, c_new)


def lstm_forward(x_idx, hidden, cell, params):
    """Mirrors LSTM.forward(x, hidden, cell): single timestep (seq_len == 1)."""
    logits, (h_new, c_new) = lstm_forward_sequence(x_idx[None, :], hidden, cell, params)
    return logits[0], (h_new, c_new)


def init_raw_params(key, vocab_size, hidden_size, num_layers, output_size):
    """PyTorch-layout parameters (gate order [i, f, g, o])."""
    ks = jax.random.split(key, 7)
    H, L, O = hidden_size, num_layers, output_size
    bound = 1.0 / (H ** 0.5)
    return {
        "embed": jax.random.normal(ks[0], (vocab_size, H), jnp.float32),
        # layer-0 input size == H (embedding dim == hidden_size) so shapes are shared
        "w_ih": jax.random.uniform(ks[1], (L, 4 * H, H), jnp.float32, -bound, bound),
        "w_hh": jax.random.uniform(ks[2], (L, 4 * H, H), jnp.float32, -bound, bound),
        "b_ih": jax.random.uniform(ks[3], (L, 4 * H), jnp.float32, -bound, bound),
        "b_hh": jax.random.uniform(ks[4], (L, 4 * H), jnp.float32, -bound, bound),
        "fc_w": jax.random.uniform(ks[5], (O, H), jnp.float32, -bound, bound),
        "fc_b": jax.random.uniform(ks[6], (O,), jnp.float32, -bound, bound),
    }


def to_kernel_params(raw):
    """One-time conversion to the kernel-friendly layout (pre-transposed, bias-fused)."""
    L, fourH, H = raw["w_ih"].shape
    O = raw["fc_w"].shape[0]
    return {
        "embed": raw["embed"],                                       # (V, H)
        "w_x": jnp.transpose(raw["w_ih"], (0, 2, 1)),                # (L, H, 4H)
        "w_h": jnp.transpose(raw["w_hh"], (0, 2, 1)),                # (L, H, 4H)
        "b": (raw["b_ih"] + raw["b_hh"]).reshape(L, 1, fourH),       # (L, 1, 4H)
        "fc_w_t": raw["fc_w"].T,                                     # (H, O)
        "fc_b_row": raw["fc_b"].reshape(1, O),                       # (1, O)
    }


def lstm_reference(ids_tb, hidden, cell, raw):
    """Pure-JAX reference with PyTorch LSTM semantics (tolerance check)."""
    T, B = ids_tb.shape
    L, _, H = hidden.shape
    h, c = hidden, cell
    outs = []
    for t in range(T):
        x = raw["embed"][ids_tb[t]]
        new_h, new_c = [], []
        for l in range(L):
            gates = (x @ raw["w_ih"][l].T + h[l] @ raw["w_hh"][l].T
                     + raw["b_ih"][l] + raw["b_hh"][l])
            i_g, f_g, g_g, o_g = jnp.split(gates, 4, axis=1)
            i_g = jax.nn.sigmoid(i_g)
            f_g = jax.nn.sigmoid(f_g)
            g_g = jnp.tanh(g_g)
            o_g = jax.nn.sigmoid(o_g)
            cc = f_g * c[l] + i_g * g_g
            hh = o_g * jnp.tanh(cc)
            new_h.append(hh)
            new_c.append(cc)
            x = hh
        h = jnp.stack(new_h)
        c = jnp.stack(new_c)
        outs.append(x @ raw["fc_w"].T + raw["fc_b"])
    return jnp.stack(outs), h, c


if __name__ == "__main__":
    vocab_size = 16      # input_size (embedding vocab)
    hidden_size = 32
    num_layers = 2
    output_size = 8
    batch = 2
    seq_len = 8          # fused-sequence demo

    key = jax.random.PRNGKey(0)
    pkey, xkey, skey = jax.random.split(key, 3)
    raw = init_raw_params(pkey, vocab_size, hidden_size, num_layers, output_size)
    params = to_kernel_params(raw)

    hidden = jnp.zeros((num_layers, batch, hidden_size), jnp.float32)  # init_hidden
    cell = jnp.zeros((num_layers, batch, hidden_size), jnp.float32)

    # ---- single-step forward (exact PyTorch module semantics) ----
    x = jax.random.randint(xkey, (batch,), 0, vocab_size, dtype=jnp.int32)
    out, (h1, c1) = jax.jit(lstm_forward)(x, hidden, cell, params)
    jax.block_until_ready((out, h1, c1))
    assert out.shape == (batch, output_size)
    assert h1.shape == (num_layers, batch, hidden_size)
    assert c1.shape == (num_layers, batch, hidden_size)

    # ---- fused multi-step forward: T recurrent steps in ONE pallas_call ----
    ids_seq = jax.random.randint(skey, (seq_len, batch), 0, vocab_size, dtype=jnp.int32)
    logits, (hT, cT) = jax.jit(lstm_forward_sequence)(ids_seq, hidden, cell, params)
    jax.block_until_ready((logits, hT, cT))
    assert logits.shape == (seq_len, batch, output_size)

    # ---- numerical check vs. pure-JAX reference (sigmoid-via-tanh ~1e-7 delta) ----
    ref_logits, ref_h, ref_c = lstm_reference(ids_seq, hidden, cell, raw)
    assert jnp.allclose(logits, ref_logits, atol=2e-4, rtol=2e-4)
    assert jnp.allclose(hT, ref_h, atol=2e-4, rtol=2e-4)
    assert jnp.allclose(cT, ref_c, atol=2e-4, rtol=2e-4)

    ref1_out, ref1_h, ref1_c = lstm_reference(x[None, :], hidden, cell, raw)
    assert jnp.allclose(out, ref1_out[0], atol=2e-4, rtol=2e-4)
    assert jnp.allclose(h1, ref1_h, atol=2e-4, rtol=2e-4)
    assert jnp.allclose(c1, ref1_c, atol=2e-4, rtol=2e-4)

    print("KERNEL_OK")
</pallas_src>

<mosaic_0001>
module attributes {stable_mosaic.version = 11 : i64} {
  func.func @lstm_seq_kernel(%arg0: i32, %arg1: memref<1x2xi32, #tpu.memory_space<smem>>, %arg2: memref<16x32xf32, #tpu.memory_space<vmem>>, %arg3: memref<2x2x32xf32, #tpu.memory_space<vmem>>, %arg4: memref<2x2x32xf32, #tpu.memory_space<vmem>>, %arg5: memref<2x32x128xf32, #tpu.memory_space<vmem>>, %arg6: memref<2x32x128xf32, #tpu.memory_space<vmem>>, %arg7: memref<2x1x128xf32, #tpu.memory_space<vmem>>, %arg8: memref<32x8xf32, #tpu.memory_space<vmem>>, %arg9: memref<1x8xf32, #tpu.memory_space<vmem>>, %arg10: memref<1x2x8xf32, #tpu.memory_space<vmem>>, %arg11: memref<2x2x32xf32, #tpu.memory_space<vmem>>, %arg12: memref<2x2x32xf32, #tpu.memory_space<vmem>>, %arg13: memref<2x2x32xf32, #tpu.memory_space<vmem>>, %arg14: memref<2x2x32xf32, #tpu.memory_space<vmem>>) attributes {dimension_semantics = [#tpu.dimension_semantics<arbitrary>], iteration_bounds = array<i64: 1>, scalar_prefetch = 1 : i64, scratch_operands = 2 : i64, tpu.core_type = #tpu.core_type<tc>, window_params = [{pipeline_mode = #tpu.pipeline_mode<synchronous>, transform_indices = @transform_0, window_bounds = array<i64: 16, 32>}, {pipeline_mode = #tpu.pipeline_mode<synchronous>, transform_indices = @transform_1, window_bounds = array<i64: 2, 2, 32>}, {pipeline_mode = #tpu.pipeline_mode<synchronous>, transform_indices = @transform_2, window_bounds = array<i64: 2, 2, 32>}, {pipeline_mode = #tpu.pipeline_mode<synchronous>, transform_indices = @transform_3, window_bounds = array<i64: 2, 32, 128>}, {pipeline_mode = #tpu.pipeline_mode<synchronous>, transform_indices = @transform_4, window_bounds = array<i64: 2, 32, 128>}, {pipeline_mode = #tpu.pipeline_mode<synchronous>, transform_indices = @transform_5, window_bounds = array<i64: 2, 1, 128>}, {pipeline_mode = #tpu.pipeline_mode<synchronous>, transform_indices = @transform_6, window_bounds = array<i64: 32, 8>}, {pipeline_mode = #tpu.pipeline_mode<synchronous>, transform_indices = @transform_7, window_bounds = array<i64: 1, 8>}, {transform_indices = @transform_8, window_bounds = array<i64: 1, 2, 8>}, {pipeline_mode = #tpu.pipeline_mode<synchronous>, transform_indices = @transform_9, window_bounds = array<i64: 2, 2, 32>}, {pipeline_mode = #tpu.pipeline_mode<synchronous>, transform_indices = @transform_10, window_bounds = array<i64: 2, 2, 32>}]} {
    %c0_i32 = arith.constant 0 : i32
    %0 = arith.cmpi eq, %arg0, %c0_i32 : i32
    %1 = arith.extui %0 : i1 to i32
    %c0_i32_0 = arith.constant 0 : i32
    %2 = arith.cmpi ne, %1, %c0_i32_0 : i32
    scf.if %2 {
      %c0_63 = arith.constant 0 : index
      %c0_64 = arith.constant 0 : index
      %c0_65 = arith.constant 0 : index
      %110 = vector.load %arg3[%c0_63, %c0_64, %c0_65] : memref<2x2x32xf32, #tpu.memory_space<vmem>>, vector<2x2x32xf32>
      %c0_66 = arith.constant 0 : index
      %c0_67 = arith.constant 0 : index
      %c0_68 = arith.constant 0 : index
      %111 = vector.load %arg13[%c0_66, %c0_67, %c0_68] : memref<2x2x32xf32, #tpu.memory_space<vmem>>, vector<2x2x32xf32>
      tpu.vector_store %arg13[%c0_66, %c0_67, %c0_68], %110 {strides = array<i32>} : memref<2x2x32xf32, #tpu.memory_space<vmem>>, vector<2x2x32xf32>,
      %c0_69 = arith.constant 0 : index
      %c0_70 = arith.constant 0 : index
      %c0_71 = arith.constant 0 : index
      %112 = vector.load %arg4[%c0_69, %c0_70, %c0_71] : memref<2x2x32xf32, #tpu.memory_space<vmem>>, vector<2x2x32xf32>
      %c0_72 = arith.constant 0 : index
      %c0_73 = arith.constant 0 : index
      %c0_74 = arith.constant 0 : index
      %113 = vector.load %arg14[%c0_72, %c0_73, %c0_74] : memref<2x2x32xf32, #tpu.memory_space<vmem>>, vector<2x2x32xf32>
      tpu.vector_store %arg14[%c0_72, %c0_73, %c0_74], %112 {strides = array<i32>} : memref<2x2x32xf32, #tpu.memory_space<vmem>>, vector<2x2x32xf32>,
    } else {
    }
    %3 = tpu.iota {dimensions = array<i32: 0>} : vector<2x16xi32>
    %4 = tpu.iota {dimensions = array<i32: 1>} : vector<2x16xi32>
    %5 = arith.index_cast %arg0 : i32 to index
    %c0 = arith.constant 0 : index
    %6 = memref.load %arg1[%5, %c0] : memref<1x2xi32, #tpu.memory_space<smem>>
    %7 = vector.broadcast %6 : i32 to vector<2x16xi32>
    %c1_i32 = arith.constant 1 : i32
    %8 = vector.broadcast %c1_i32 : i32 to vector<2x16xi32>
    %9 = arith.cmpi eq, %3, %8 : vector<2x16xi32>
    %10 = arith.index_cast %arg0 : i32 to index
    %c1 = arith.constant 1 : index
    %11 = memref.load %arg1[%10, %c1] : memref<1x2xi32, #tpu.memory_space<smem>>
    %12 = vector.broadcast %11 : i32 to vector<2x16xi32>
    %13 = arith.select %9, %12, %7 : vector<2x16xi1>, vector<2x16xi32>
    %14 = arith.cmpi eq, %4, %13 : vector<2x16xi32>
    %15 = arith.extui %14 : vector<2x16xi1> to vector<2x16xi32>
    %16 = arith.sitofp %15 : vector<2x16xi32> to vector<2x16xf32>
    %c0_1 = arith.constant 0 : index
    %c0_2 = arith.constant 0 : index
    %17 = vector.load %arg2[%c0_1, %c0_2] : memref<16x32xf32, #tpu.memory_space<vmem>>, vector<16x32xf32>
    %cst = arith.constant dense<0.000000e+00> : vector<2x32xf32>
    %18 = tpu.matmul %16, %17, %cst {dimension_numbers = #tpu.dot_dimension_numbers<[1], [0], [0], [1], [0, 0, 1, 1], [], []>} : vector<2x16xf32>, vector<16x32xf32>, vector<2x32xf32> -> vector<2x32xf32>
    %19 = tpu.iota {dimensions = array<i32: 1>} : vector<2x128xi32>
    %c64_i32 = arith.constant 64 : i32
    %20 = vector.broadcast %c64_i32 : i32 to vector<2x128xi32>
    %21 = arith.cmpi sge, %19, %20 : vector<2x128xi32>
    %c96_i32 = arith.constant 96 : i32
    %22 = vector.broadcast %c96_i32 : i32 to vector<2x128xi32>
    %23 = arith.cmpi slt, %19, %22 : vector<2x128xi32>
    %24 = arith.andi %21, %23 : vector<2x128xi1>
    %cst_3 = arith.constant 1.000000e+00 : f32
    %cst_4 = arith.constant 5.000000e-01 : f32
    %25 = vector.broadcast %cst_3 : f32 to vector<2x128xf32>
    %26 = vector.broadcast %cst_4 : f32 to vector<2x128xf32>
    %27 = arith.select %24, %25, %26 : vector<2x128xi1>, vector<2x128xf32>
    %cst_5 = arith.constant 0.000000e+00 : f32
    %cst_6 = arith.constant 5.000000e-01 : f32
    %28 = vector.broadcast %cst_5 : f32 to vector<2x128xf32>
    %29 = vector.broadcast %cst_6 : f32 to vector<2x128xf32>
    %30 = arith.select %24, %28, %29 : vector<2x128xi1>, vector<2x128xf32>
    %c0_7 = arith.constant 0 : index
    %c0_8 = arith.constant 0 : index
    %c0_9 = arith.constant 0 : index
    %31 = vector.load %arg13[%c0_7, %c0_8, %c0_9] : memref<2x2x32xf32, #tpu.memory_space<vmem>>, vector<1x2x32xf32>
    %32 = vector.shape_cast %31 : vector<1x2x32xf32> to vector<2x32xf32>
    %c0_10 = arith.constant 0 : index
    %c0_11 = arith.constant 0 : index
    %c0_12 = arith.constant 0 : index
    %33 = vector.load %arg14[%c0_10, %c0_11, %c0_12] : memref<2x2x32xf32, #tpu.memory_space<vmem>>, vector<1x2x32xf32>
    %34 = vector.shape_cast %33 : vector<1x2x32xf32> to vector<2x32xf32>
    %c0_13 = arith.constant 0 : index
    %c0_14 = arith.constant 0 : index
    %c0_15 = arith.constant 0 : index
    %35 = vector.load %arg5[%c0_13, %c0_14, %c0_15] : memref<2x32x128xf32, #tpu.memory_space<vmem>>, vector<1x32x128xf32>
    %36 = vector.shape_cast %35 : vector<1x32x128xf32> to vector<32x128xf32>
    %cst_16 = arith.constant dense<0.000000e+00> : vector<2x128xf32>
    %37 = tpu.matmul %18, %36, %cst_16 {dimension_numbers = #tpu.dot_dimension_numbers<[1], [0], [0], [1], [0, 0, 1, 1], [], []>} : vector<2x32xf32>, vector<32x128xf32>, vector<2x128xf32> -> vector<2x128xf32>
    %c0_17 = arith.constant 0 : index
    %c0_18 = arith.constant 0 : index
    %c0_19 = arith.constant 0 : index
    %38 = vector.load %arg6[%c0_17, %c0_18, %c0_19] : memref<2x32x128xf32, #tpu.memory_space<vmem>>, vector<1x32x128xf32>
    %39 = vector.shape_cast %38 : vector<1x32x128xf32> to vector<32x128xf32>
    %cst_20 = arith.constant dense<0.000000e+00> : vector<2x128xf32>
    %40 = tpu.matmul %32, %39, %cst_20 {dimension_numbers = #tpu.dot_dimension_numbers<[1], [0], [0], [1], [0, 0, 1, 1], [], []>} : vector<2x32xf32>, vector<32x128xf32>, vector<2x128xf32> -> vector<2x128xf32>
    %41 = arith.addf %37, %40 : vector<2x128xf32>
    %c0_21 = arith.constant 0 : index
    %c0_22 = arith.constant 0 : index
    %c0_23 = arith.constant 0 : index
    %42 = vector.load %arg7[%c0_21, %c0_22, %c0_23] : memref<2x1x128xf32, #tpu.memory_space<vmem>>, vector<1x1x128xf32>
    %43 = vector.shape_cast %42 : vector<1x1x128xf32> to vector<1x128xf32>
    %44 = vector.broadcast %43 : vector<1x128xf32> to vector<2x128xf32>
    %45 = arith.addf %41, %44 : vector<2x128xf32>
    %46 = arith.mulf %45, %27 : vector<2x128xf32>
    %47 = math.tanh %46 : vector<2x128xf32>
    %48 = arith.mulf %47, %27 : vector<2x128xf32>
    %49 = arith.addf %48, %30 : vector<2x128xf32>
    %50 = vector.extract_strided_slice %49 {offsets = [0, 0], sizes = [2, 32], strides = [1, 1]} : vector<2x128xf32> to vector<2x32xf32>
    %51 = vector.extract_strided_slice %49 {offsets = [0, 32], sizes = [2, 32], strides = [1, 1]} : vector<2x128xf32> to vector<2x32xf32>
    %52 = vector.extract_strided_slice %49 {offsets = [0, 64], sizes = [2, 32], strides = [1, 1]} : vector<2x128xf32> to vector<2x32xf32>
    %53 = vector.extract_strided_slice %49 {offsets = [0, 96], sizes = [2, 32], strides = [1, 1]} : vector<2x128xf32> to vector<2x32xf32>
    %54 = arith.mulf %51, %34 : vector<2x32xf32>
    %55 = arith.mulf %50, %52 : vector<2x32xf32>
    %56 = arith.addf %54, %55 : vector<2x32xf32>
    %57 = math.tanh %56 : vector<2x32xf32>
    %58 = arith.mulf %53, %57 : vector<2x32xf32>
    %c0_24 = arith.constant 0 : index
    %c0_25 = arith.constant 0 : index
    %c0_26 = arith.constant 0 : index
    %59 = vector.load %arg13[%c0_24, %c0_25, %c0_26] : memref<2x2x32xf32, #tpu.memory_space<vmem>>, vector<1x2x32xf32>
    %60 = vector.shape_cast %59 : vector<1x2x32xf32> to vector<2x32xf32>
    %61 = vector.shape_cast %58 : vector<2x32xf32> to vector<1x2x32xf32>
    tpu.vector_store %arg13[%c0_24, %c0_25, %c0_26], %61 {strides = array<i32>} : memref<2x2x32xf32, #tpu.memory_space<vmem>>, vector<1x2x32xf32>,
    %c0_27 = arith.constant 0 : index
    %c0_28 = arith.constant 0 : index
    %c0_29 = arith.constant 0 : index
    %62 = vector.load %arg14[%c0_27, %c0_28, %c0_29] : memref<2x2x32xf32, #tpu.memory_space<vmem>>, vector<1x2x32xf32>
    %63 = vector.shape_cast %62 : vector<1x2x32xf32> to vector<2x32xf32>
    %64 = vector.shape_cast %56 : vector<2x32xf32> to vector<1x2x32xf32>
    tpu.vector_store %arg14[%c0_27, %c0_28, %c0_29], %64 {strides = array<i32>} : memref<2x2x32xf32, #tpu.memory_space<vmem>>, vector<1x2x32xf32>,
    %c1_30 = arith.constant 1 : index
    %c0_31 = arith.constant 0 : index
    %c0_32 = arith.constant 0 : index
    %65 = vector.load %arg13[%c1_30, %c0_31, %c0_32] : memref<2x2x32xf32, #tpu.memory_space<vmem>>, vector<1x2x32xf32>
    %66 = vector.shape_cast %65 : vector<1x2x32xf32> to vector<2x32xf32>
    %c1_33 = arith.constant 1 : index
    %c0_34 = arith.constant 0 : index
    %c0_35 = arith.constant 0 : index
    %67 = vector.load %arg14[%c1_33, %c0_34, %c0_35] : memref<2x2x32xf32, #tpu.memory_space<vmem>>, vector<1x2x32xf32>
    %68 = vector.shape_cast %67 : vector<1x2x32xf32> to vector<2x32xf32>
    %c1_36 = arith.constant 1 : index
    %c0_37 = arith.constant 0 : index
    %c0_38 = arith.constant 0 : index
    %69 = vector.load %arg5[%c1_36, %c0_37, %c0_38] : memref<2x32x128xf32, #tpu.memory_space<vmem>>, vector<1x32x128xf32>
    %70 = vector.shape_cast %69 : vector<1x32x128xf32> to vector<32x128xf32>
    %cst_39 = arith.constant dense<0.000000e+00> : vector<2x128xf32>
    %71 = tpu.matmul %58, %70, %cst_39 {dimension_numbers = #tpu.dot_dimension_numbers<[1], [0], [0], [1], [0, 0, 1, 1], [], []>} : vector<2x32xf32>, vector<32x128xf32>, vector<2x128xf32> -> vector<2x128xf32>
    %c1_40 = arith.constant 1 : index
    %c0_41 = arith.constant 0 : index
    %c0_42 = arith.constant 0 : index
    %72 = vector.load %arg6[%c1_40, %c0_41, %c0_42] : memref<2x32x128xf32, #tpu.memory_space<vmem>>, vector<1x32x128xf32>
    %73 = vector.shape_cast %72 : vector<1x32x128xf32> to vector<32x128xf32>
    %cst_43 = arith.constant dense<0.000000e+00> : vector<2x128xf32>
    %74 = tpu.matmul %66, %73, %cst_43 {dimension_numbers = #tpu.dot_dimension_numbers<[1], [0], [0], [1], [0, 0, 1, 1], [], []>} : vector<2x32xf32>, vector<32x128xf32>, vector<2x128xf32> -> vector<2x128xf32>
    %75 = arith.addf %71, %74 : vector<2x128xf32>
    %c1_44 = arith.constant 1 : index
    %c0_45 = arith.constant 0 : index
    %c0_46 = arith.constant 0 : index
    %76 = vector.load %arg7[%c1_44, %c0_45, %c0_46] : memref<2x1x128xf32, #tpu.memory_space<vmem>>, vector<1x1x128xf32>
    %77 = vector.shape_cast %76 : vector<1x1x128xf32> to vector<1x128xf32>
    %78 = vector.broadcast %77 : vector<1x128xf32> to vector<2x128xf32>
    %79 = arith.addf %75, %78 : vector<2x128xf32>
    %80 = arith.mulf %79, %27 : vector<2x128xf32>
    %81 = math.tanh %80 : vector<2x128xf32>
    %82 = arith.mulf %81, %27 : vector<2x128xf32>
    %83 = arith.addf %82, %30 : vector<2x128xf32>
    %84 = vector.extract_strided_slice %83 {offsets = [0, 0], sizes = [2, 32], strides = [1, 1]} : vector<2x128xf32> to vector<2x32xf32>
    %85 = vector.extract_strided_slice %83 {offsets = [0, 32], sizes = [2, 32], strides = [1, 1]} : vector<2x128xf32> to vector<2x32xf32>
    %86 = vector.extract_strided_slice %83 {offsets = [0, 64], sizes = [2, 32], strides = [1, 1]} : vector<2x128xf32> to vector<2x32xf32>
    %87 = vector.extract_strided_slice %83 {offsets = [0, 96], sizes = [2, 32], strides = [1, 1]} : vector<2x128xf32> to vector<2x32xf32>
    %88 = arith.mulf %85, %68 : vector<2x32xf32>
    %89 = arith.mulf %84, %86 : vector<2x32xf32>
    %90 = arith.addf %88, %89 : vector<2x32xf32>
    %91 = math.tanh %90 : vector<2x32xf32>
    %92 = arith.mulf %87, %91 : vector<2x32xf32>
    %c1_47 = arith.constant 1 : index
    %c0_48 = arith.constant 0 : index
    %c0_49 = arith.constant 0 : index
    %93 = vector.load %arg13[%c1_47, %c0_48, %c0_49] : memref<2x2x32xf32, #tpu.memory_space<vmem>>, vector<1x2x32xf32>
    %94 = vector.shape_cast %93 : vector<1x2x32xf32> to vector<2x32xf32>
    %95 = vector.shape_cast %92 : vector<2x32xf32> to vector<1x2x32xf32>
    tpu.vector_store %arg13[%c1_47, %c0_48, %c0_49], %95 {strides = array<i32>} : memref<2x2x32xf32, #tpu.memory_space<vmem>>, vector<1x2x32xf32>,
    %c1_50 = arith.constant 1 : index
    %c0_51 = arith.constant 0 : index
    %c0_52 = arith.constant 0 : index
    %96 = vector.load %arg14[%c1_50, %c0_51, %c0_52] : memref<2x2x32xf32, #tpu.memory_space<vmem>>, vector<1x2x32xf32>
    %97 = vector.shape_cast %96 : vector<1x2x32xf32> to vector<2x32xf32>
    %98 = vector.shape_cast %90 : vector<2x32xf32> to vector<1x2x32xf32>
    tpu.vector_store %arg14[%c1_50, %c0_51, %c0_52], %98 {strides = array<i32>} : memref<2x2x32xf32, #tpu.memory_space<vmem>>, vector<1x2x32xf32>,
    %c0_53 = arith.constant 0 : index
    %c0_54 = arith.constant 0 : index
    %99 = vector.load %arg8[%c0_53, %c0_54] : memref<32x8xf32, #tpu.memory_space<vmem>>, vector<32x8xf32>
    %cst_55 = arith.constant dense<0.000000e+00> : vector<2x8xf32>
    %100 = tpu.matmul %92, %99, %cst_55 {dimension_numbers = #tpu.dot_dimension_numbers<[1], [0], [0], [1], [0, 0, 1, 1], [], []>} : vector<2x32xf32>, vector<32x8xf32>, vector<2x8xf32> -> vector<2x8xf32>
    %c0_56 = arith.constant 0 : index
    %c0_57 = arith.constant 0 : index
    %101 = vector.load %arg9[%c0_56, %c0_57] : memref<1x8xf32, #tpu.memory_space<vmem>>, vector<1x8xf32>
    %102 = vector.broadcast %101 : vector<1x8xf32> to vector<2x8xf32>
    %103 = arith.addf %100, %102 : vector<2x8xf32>
    %c0_58 = arith.constant 0 : index
    %c0_59 = arith.constant 0 : index
    %c0_60 = arith.constant 0 : index
    %104 = vector.load %arg10[%c0_58, %c0_59, %c0_60] : memref<1x2x8xf32, #tpu.memory_space<vmem>>, vector<1x2x8xf32>
    %105 = vector.shape_cast %104 : vector<1x2x8xf32> to vector<2x8xf32>
    %106 = vector.shape_cast %103 : vector<2x8xf32> to vector<1x2x8xf32>
    tpu.vector_store %arg10[%c0_58, %c0_59, %c0_60], %106 {strides = array<i32>} : memref<1x2x8xf32, #tpu.memory_space<vmem>>, vector<1x2x8xf32>,
    %c0_i32_61 = arith.constant 0 : i32
    %107 = arith.cmpi eq, %arg0, %c0_i32_61 : i32
    %108 = arith.extui %107 : i1 to i32
    %c0_i32_62 = arith.constant 0 : i32
    %109 = arith.cmpi ne, %108, %c0_i32_62 : i32
    scf.if %109 {
      %c0_63 = arith.constant 0 : index
      %c0_64 = arith.constant 0 : index
      %c0_65 = arith.constant 0 : index
      %110 = vector.load %arg13[%c0_63, %c0_64, %c0_65] : memref<2x2x32xf32, #tpu.memory_space<vmem>>, vector<2x2x32xf32>
      %c0_66 = arith.constant 0 : index
      %c0_67 = arith.constant 0 : index
      %c0_68 = arith.constant 0 : index
      %111 = vector.load %arg11[%c0_66, %c0_67, %c0_68] : memref<2x2x32xf32, #tpu.memory_space<vmem>>, vector<2x2x32xf32>
      tpu.vector_store %arg11[%c0_66, %c0_67, %c0_68], %110 {strides = array<i32>} : memref<2x2x32xf32, #tpu.memory_space<vmem>>, vector<2x2x32xf32>,
      %c0_69 = arith.constant 0 : index
      %c0_70 = arith.constant 0 : index
      %c0_71 = arith.constant 0 : index
      %112 = vector.load %arg14[%c0_69, %c0_70, %c0_71] : memref<2x2x32xf32, #tpu.memory_space<vmem>>, vector<2x2x32xf32>
      %c0_72 = arith.constant 0 : index
      %c0_73 = arith.constant 0 : index
      %c0_74 = arith.constant 0 : index
      %113 = vector.load %arg12[%c0_72, %c0_73, %c0_74] : memref<2x2x32xf32, #tpu.memory_space<vmem>>, vector<2x2x32xf32>
      tpu.vector_store %arg12[%c0_72, %c0_73, %c0_74], %112 {strides = array<i32>} : memref<2x2x32xf32, #tpu.memory_space<vmem>>, vector<2x2x32xf32>,
    } else {
    }
    return
  }
  func.func @transform_0(%arg0: i32, %arg1: memref<1x2xi32, #tpu.memory_space<smem>>) -> (i32, i32) {
    %c0_i32 = arith.constant 0 : i32
    %c0_i32_0 = arith.constant 0 : i32
    %c0_i32_1 = arith.constant 0 : i32
    return %c0_i32, %c0_i32_0 : i32, i32
  }
  func.func @transform_1(%arg0: i32, %arg1: memref<1x2xi32, #tpu.memory_space<smem>>) -> (i32, i32, i32) {
    %c0_i32 = arith.constant 0 : i32
    %c0_i32_0 = arith.constant 0 : i32
    %c0_i32_1 = arith.constant 0 : i32
    %c0_i32_2 = arith.constant 0 : i32
    return %c0_i32, %c0_i32_0, %c0_i32_1 : i32, i32, i32
  }
  func.func @transform_2(%arg0: i32, %arg1: memref<1x2xi32, #tpu.memory_space<smem>>) -> (i32, i32, i32) {
    %c0_i32 = arith.constant 0 : i32
    %c0_i32_0 = arith.constant 0 : i32
    %c0_i32_1 = arith.constant 0 : i32
    %c0_i32_2 = arith.constant 0 : i32
    return %c0_i32, %c0_i32_0, %c0_i32_1 : i32, i32, i32
  }
  func.func @transform_3(%arg0: i32, %arg1: memref<1x2xi32, #tpu.memory_space<smem>>) -> (i32, i32, i32) {
    %c0_i32 = arith.constant 0 : i32
    %c0_i32_0 = arith.constant 0 : i32
    %c0_i32_1 = arith.constant 0 : i32
    %c0_i32_2 = arith.constant 0 : i32
    return %c0_i32, %c0_i32_0, %c0_i32_1 : i32, i32, i32
  }
  func.func @transform_4(%arg0: i32, %arg1: memref<1x2xi32, #tpu.memory_space<smem>>) -> (i32, i32, i32) {
    %c0_i32 = arith.constant 0 : i32
    %c0_i32_0 = arith.constant 0 : i32
    %c0_i32_1 = arith.constant 0 : i32
    %c0_i32_2 = arith.constant 0 : i32
    return %c0_i32, %c0_i32_0, %c0_i32_1 : i32, i32, i32
  }
  func.func @transform_5(%arg0: i32, %arg1: memref<1x2xi32, #tpu.memory_space<smem>>) -> (i32, i32, i32) {
    %c0_i32 = arith.constant 0 : i32
    %c0_i32_0 = arith.constant 0 : i32
    %c0_i32_1 = arith.constant 0 : i32
    %c0_i32_2 = arith.constant 0 : i32
    return %c0_i32, %c0_i32_0, %c0_i32_1 : i32, i32, i32
  }
  func.func @transform_6(%arg0: i32, %arg1: memref<1x2xi32, #tpu.memory_space<smem>>) -> (i32, i32) {
    %c0_i32 = arith.constant 0 : i32
    %c0_i32_0 = arith.constant 0 : i32
    %c0_i32_1 = arith.constant 0 : i32
    return %c0_i32, %c0_i32_0 : i32, i32
  }
  func.func @transform_7(%arg0: i32, %arg1: memref<1x2xi32, #tpu.memory_space<smem>>) -> (i32, i32) {
    %c0_i32 = arith.constant 0 : i32
    %c0_i32_0 = arith.constant 0 : i32
    %c0_i32_1 = arith.constant 0 : i32
    return %c0_i32, %c0_i32_0 : i32, i32
  }
  func.func @transform_8(%arg0: i32, %arg1: memref<1x2xi32, #tpu.memory_space<smem>>) -> (i32, i32, i32) {
    %c0_i32 = arith.constant 0 : i32
    %c0_i32_0 = arith.constant 0 : i32
    %c0_i32_1 = arith.constant 0 : i32
    return %arg0, %c0_i32, %c0_i32_0 : i32, i32, i32
  }
  func.func @transform_9(%arg0: i32, %arg1: memref<1x2xi32, #tpu.memory_space<smem>>) -> (i32, i32, i32) {
    %c0_i32 = arith.constant 0 : i32
    %c0_i32_0 = arith.constant 0 : i32
    %c0_i32_1 = arith.constant 0 : i32
    %c0_i32_2 = arith.constant 0 : i32
    return %c0_i32, %c0_i32_0, %c0_i32_1 : i32, i32, i32
  }
  func.func @transform_10(%arg0: i32, %arg1: memref<1x2xi32, #tpu.memory_space<smem>>) -> (i32, i32, i32) {
    %c0_i32 = arith.constant 0 : i32
    %c0_i32_0 = arith.constant 0 : i32
    %c0_i32_1 = arith.constant 0 : i32
    %c0_i32_2 = arith.constant 0 : i32
    return %c0_i32, %c0_i32_0, %c0_i32_1 : i32, i32, i32
  }
}

</mosaic_0001>

<bundles_post_ra>
// kernel: lstm_forward.1
= control target key start
LH: loop header
LB: loop body
LE: loop exit
PB: predicated region body
PF: predicated region fallthrough
CT: control target
= control target key end

     0   :  { %s1341_s0 = inlined_call_operand.hbm [shape: s32[1,2], index: 0, kind: input, shape index: {}]   ;;  %s1342_s1 = inlined_call_operand.hbm [shape: f32[16,32], index: 1, kind: input, shape index: {}]   ;;  %s1343_s2 = inlined_call_operand.vmem [shape: f32[2,2,32], index: 2, kind: input, shape index: {}]   ;;  %s1344_s3 = inlined_call_operand.vmem [shape: f32[2,2,32], index: 3, kind: input, shape index: {}]   ;;  %s1345_s4 = inlined_call_operand.vmem [shape: f32[2,32,128], index: 4, kind: input, shape index: {}]   ;;  %s1346_s5 = inlined_call_operand.hbm [shape: f32[2,32,128], index: 5, kind: input, shape index: {}]   ;;  %s1347_s6 = inlined_call_operand.vmem [shape: f32[2,1,128], index: 6, kind: input, shape index: {}]   ;;  %s1348_s7 = inlined_call_operand.vmem [shape: f32[32,8], index: 7, kind: input, shape index: {}]   ;;  %s1349_s8 = inlined_call_operand.hbm [shape: f32[1,8], index: 8, kind: input, shape index: {}]   ;;  %s1350_s9 = inlined_call_operand.hbm [shape: f32[1,2,8], index: 9, kind: output, shape index: {0}]   ;;  %s1351_s10 = inlined_call_operand.hbm [shape: f32[2,2,32], index: 10, kind: output, shape index: {1}]   ;;  %s1352_s11 = inlined_call_operand.hbm [shape: f32[2,2,32], index: 11, kind: output, shape index: {2}]  }
   0x1   :  { %s898_s19 = scalar_lea.hbm %s1341_s0, 16 }
   0x2   :  { %p899_p0 = scmp.ne.s32.totalorder %s1341_s0, %s898_s19  ;;  %p902_p1 = scmp.lt.u32.totalorder %s898_s19, %s1341_s0 }
   0x4   :  { %p904_p2 = pnand %p902_p1, %p899_p0 }
   0x6   :  { %907 = shalt.err (!%p904_p2)  }
   0x7   :  { %s1050_s24 = smov [#allocation5]  }
   0x8   :  { %18 = dma.hbm_to_smem %s1341_s0, 16, %s1050_s24, [#allocation4] }
   0x9   :  { %1040 = dma.done.wait [#allocation4], 16 }
   0xa   :  { %1041 = vsyncadd [#allocation4], 4294967280 }
   0xb   :  { %20 = sfence }
   0xc   :  { %21 = vsyncpa [#allocation7], 0 }
   0xd   :  { %22 = vsyncpa [#allocation10], 0 }
   0xe   :  { %23 = vsyncpa [#allocation8], 0 }
   0xf   :  { %24 = vsyncpa [#allocation14], 0  ;;  %s1051_s27 = smov [#allocation9]   ;;  %s1052_s29 = smov [#allocation6]  }
  0x10   :  { %s48_s28 = sshll.u32 %s1051_s27, 4  ;;  %s30_s30 = sshll.u32 %s1052_s29, 4  ;;  %s49_s28 = int_to_ptr.vmem [resolvable:$true] %s48_s28  ;;  %s1139_s30 = int_to_ptr.vmem [resolvable:$true] %s30_s30 }
  0x11   :  { %s908_s14 = scalar_lea.hbm %s1346_s5, 1024 }
  0x12   :  { %p909_p3 = scmp.ne.s32.totalorder %s1346_s5, %s908_s14  ;;  %p912_p4 = scmp.lt.u32.totalorder %s908_s14, %s1346_s5 }
  0x14   :  { %p914_p5 = pnand %p912_p4, %p909_p3 }
  0x16   :  { %917 = shalt.err (!%p914_p5)
}
  0x17   :  { %s918_s18 = scalar_lea.vmem %s49_s28, 1024  ;;  %p923_p7 = scmp.lt.s32.totalorder %s49_s28, %s49_s28 }
  0x18   :  { %p919_p6 = scmp.ne.s32.totalorder %s49_s28, %s918_s18  ;;  %p924_p8 = scmp.lt.s32.totalorder %s918_s18, %s918_s18 }
  0x1a   :  { %p925_p9 = por %p924_p8, %p923_p7 }
  0x1c   :  { %p926_p10 = pnand %p925_p9, %p919_p6 }
  0x1e   :  { %929 = shalt.err (!%p926_p10)
}
  0x1f   :  { %s1053_s19 = smov 128   ;;  %s1054_s20 = smov 8  }
  0x20   :  { %54 = dma.hbm_to_vmem [thread:$0]  %s1346_s5, 1024, %s49_s28, [#allocation10], %s1053_s19, %s1053_s19, %s1054_s20  }
  0x21   :  { %s930_s25 = scalar_lea.hbm %s1342_s1, 256 }
  0x22   :  { %p931_p11 = scmp.ne.s32.totalorder %s1342_s1, %s930_s25  ;;  %p934_p12 = scmp.lt.u32.totalorder %s930_s25, %s1342_s1 }
  0x24   :  { %p936_p13 = pnand %p934_p12, %p931_p11 }
  0x26   :  { %939 = shalt.err (!%p936_p13)
}
  0x27   :  { %s940_s13 = scalar_lea.vmem %s1139_s30, 256  ;;  %p945_p1 = scmp.lt.s32.totalorder %s1139_s30, %s1139_s30 }
  0x28   :  { %p941_p0 = scmp.ne.s32.totalorder %s1139_s30, %s940_s13  ;;  %p946_p2 = scmp.lt.s32.totalorder %s940_s13, %s940_s13 }
  0x2a   :  { %p947_p3 = por %p946_p2, %p945_p1 }
  0x2c   :  { %p948_p4 = pnand %p947_p3, %p941_p0 }
  0x2e   :  { %951 = shalt.err (!%p948_p4)
}
  0x2f   :  { %36 = dma.hbm_to_vmem [thread:$0]  %s1342_s1, 256, %s1139_s30, [#allocation7], %s1053_s19, %s1053_s19, %s1054_s20  }
  0x30   :  { %s1055_s14 = smov [#allocation11]   ;;  %s952_s17 = scalar_lea.hbm %s1349_s8, 16 }
  0x31   :  { %s65_s15 = sshll.u32 %s1055_s14, 4  ;;  %p953_p5 = scmp.ne.s32.totalorder %s1349_s8, %s952_s17  ;;  %s66_s15 = int_to_ptr.vmem [resolvable:$true] %s65_s15 }
  0x32   :  { %p956_p6 = scmp.lt.u32.totalorder %s952_s17, %s1349_s8 }
  0x34   :  { %p958_p7 = pnand %p956_p6, %p953_p5 }
  0x36   :  { %961 = shalt.err (!%p958_p7)
}
  0x37   :  { %s962_s24 = scalar_lea.vmem %s66_s15, 16  ;;  %s966_s1 = scalar_lea.vmem %s66_s15, 32 }
  0x38   :  { %p963_p8 = scmp.ne.s32.totalorder %s66_s15, %s962_s24  ;;  %p967_p9 = scmp.lt.s32.totalorder %s66_s15, %s66_s15 }
  0x39   :  { %p968_p10 = scmp.lt.s32.totalorder %s966_s1, %s962_s24 }
  0x3b   :  { %p969_p11 = por %p968_p10, %p967_p9 }
  0x3d   :  { %p970_p12 = pnand %p969_p11, %p963_p8 }
  0x3f   :  { %973 = shalt.err (!%p970_p12)
}
  0x40   :  { %68 = dma.hbm_to_vmem [thread:$0]  %s1349_s8, 16, %s66_s15, [#allocation10]  }
  0x41   :  { %1042 = dma.done.wait [#allocation7], 256  }
  0x42   :  { %1043 = vsyncadd [#allocation7], 4294967040 }
  0x43   :  { %1044 = dma.done.wait [#allocation10], 1040  }
  0x44   :  { %1045 = vsyncadd [#allocation10], 4294966256  ;;  %v91_v0 = vlaneseq  ;;  %v1056_v1 = vmov 0.0|0.0   ;;  %vm1057_vm0 = vmmov 0   ;;  %v1058_v2 = vmov 0.0   ;;  %s96_s20 = sld [smem:[#allocation5]] }
  0x45   :  { %840 = vmatprep.subr.bf16.mxu0 %v1056_v1  ;;  %782 = vmatprep.mubr.msk.f32.mxu0 %vm1057_vm0, %v1058_v2  ;;  %s734_s25 = sld [smem:[#allocation5 + $0x1]]  ;;  %v106_v5 = vld [vmem:[#allocation6] sm:$0xff]  ;;  %v107_v6 = vld [vmem:[#allocation6 + $0x8] sm:$0xff]  ;;  %v193_v9 = vld [vmem:[#allocation9] sm:$0xff]  ;;  %vm108_vm3 = vcmask 130048   ;;  %vm84_vm4 = vcmask 254976  }
  0x46   :  { %v92_v3 = vshrl.u32 %v91_v0, 7  ;;  %843 = vmatprep.subr.bf16.mxu1 %v1056_v1  ;;  %793 = vmatprep.mubr.msk.f32.mxu1 %vm1057_vm0, %v1058_v2  ;;  %v94_v4 = vand.u32 127, %v91_v0  ;;  %v841_v10 = vpack.c.bf16 %v107_v6, %v106_v5  ;;  %v194_v12 = vld [vmem:[#allocation9 + $0x8] sm:$0xff]  ;;  %v190_v14 = vld [vmem:[%s1345_s4 + $0x8] sm:$0xff]  ;;  %v196_v17 = vld [vmem:[#allocation9 + $0x18] sm:$0xff]  ;;  %vm197_vm5 = vcmask 261120  }
  0x47   :  { %v189_v13 = vld [vmem:[%s1345_s4] sm:$0xff]  ;;  %v844_v15 = vpack.c.bf16 %v194_v12, %v193_v9  ;;  %v195_v16 = vld [vmem:[#allocation9 + $0x10] sm:$0xff]  ;;  %v191_v21 = vld [vmem:[%s1345_s4 + $0x10] sm:$0xff]  ;;  %v1059_v35 = vmov 0.5   ;;  %s1060_s21 = smov 64   ;;  %s1061_s22 = smov 32  }
  0x48   :  { %vm98_vm1 = vcmp.eq.s32.totalorder %v92_v3, 1  ;;  %842 = vmatpush3.bf16.msra.mxu0 %v841_v10  ;;  %v850_v19 = vpack.c.bf16 %v190_v14, %v189_v13  ;;  %v847_v20 = vpack.c.bf16 %v196_v17, %v195_v16  ;;  %v192_v22 = vld [vmem:[%s1345_s4 + $0x18] sm:$0xff]  ;;  %v82_v24 = vld [vmem:[%s1343_s2] sm:$0x3]  ;;  %vm182_vm6 = vcmp.ge.s32.totalorder %v94_v4, 64  ;;  %v741_v54 = vld [vmem:[%s1345_s4 + $0x28] sm:$0xff] }
  0x49   :  { %845 = vmatpush3.bf16.msra.mxu1 %v844_v15  ;;  %849 = vmatprep.subr.bf16.mxu0 %v1056_v1  ;;  %v853_v23 = vpack.c.bf16 %v192_v22, %v191_v21  ;;  %85 = vst.msk [vmem:[#allocation2] sm:$0x3] %vm84_vm4, %v82_v24  ;;  %v87_v30 = vld [vmem:[%s1344_s3] sm:$0x3]  ;;  %vm183_vm7 = vcmp.lt.s32.totalorder %v94_v4, 96  ;;  %v398_v50 = vld [vmem:[#allocation9 + $0x20] sm:$0xff] }
  0x4a   :  { %v97_v7 = vstv %s96_s20  ;;  %846 = vmatprep.subr.bf16.mxu1 %v1056_v1  ;;  %89 = vst.msk [vmem:[#allocation3] sm:$0x3] %vm84_vm4, %v87_v30  ;;  %vm184_vm8 = vmand %vm182_vm6, %vm183_vm7  ;;  %v739_v32 = vld [vmem:[%s1347_s6] ss:$0 sm:$0xff]  ;;  %v400_v55 = vld [vmem:[#allocation9 + $0x30] sm:$0xff]  ;;  %s1062_s16 = smov 96  }
  0x4b   :  { %v101_v8 = vstv %s734_s25  ;;  %v1225_v36 = vsel %vm184_vm8, 1.0, %v1059_v35  ;;  %v1228_v40 = vsel %vm184_vm8, 0.0, %v1059_v35  ;;  %v399_v51 = vld [vmem:[#allocation9 + $0x28] sm:$0xff]  ;;  %v401_v56 = vld [vmem:[#allocation9 + $0x38] sm:$0xff]  ;;  %v743_v59 = vld [vmem:[%s1345_s4 + $0x38] sm:$0xff] }
  0x4c   :  { %v102_v11 = vsel %vm98_vm1, %v101_v8, %v97_v7  ;;  %v740_v52 = vld [vmem:[%s1345_s4 + $0x20] sm:$0xff]  ;;  %v856_v53 = vpack.c.bf16 %v399_v51, %v398_v50  ;;  %v742_v58 = vld [vmem:[%s1345_s4 + $0x30] sm:$0xff]  ;;  %v859_v61 = vpack.c.bf16 %v401_v56, %v400_v55 }
  0x4d   :  { %vm103_vm2 = vcmp.eq.s32.totalorder %v94_v4, %v102_v11  ;;  %848 = vmatpush3.bf16.msra.mxu1 %v847_v20  ;;  %v862_v57 = vpack.c.bf16 %v741_v54, %v740_v52  ;;  %v83_v60 = vld [vmem:[%s1343_s2 + $0x2] sm:$0x3]  ;;  %v865_v62 = vpack.c.bf16 %v743_v59, %v742_v58  ;;  %v747_v11 = vld [vmem:[%s1347_s6 + $0x1] ss:$0 sm:$0xff] }
  0x4e   :  { %v735_v18 = vsel %vm103_vm2, 1.0, %v1058_v2  ;;  %855 = vmatprep.subr.bf16.mxu1 %v1056_v1  ;;  %86 = vst.msk [vmem:[#allocation2 + $0x2] sm:$0x3] %vm84_vm4, %v83_v60  ;;  %v88_v3 = vld [vmem:[%s1344_s3 + $0x2] sm:$0x3] }
  0x4f   :  { %783 = vmatmul.mubr.msk.f32.vlgmr.msra.gmra.mrb[0].mxu0 %vm108_vm3, %v735_v18  ;;  %90 = vst.msk [vmem:[#allocation3 + $0x2] sm:$0x3] %vm84_vm4, %v88_v3 }
  0x50   :  { %851 = vmatpush3.bf16.msra.mxu0 %v850_v19  ;;  %804 = vmatprep.mubr.msk.f32.mxu0 %vm1057_vm0, %v1058_v2  ;;  %v187_v25 = vld [vmem:[#allocation2] sm:$0x3] }
  0x51   :  { %852 = vmatprep.subr.bf16.mxu0 %v1056_v1  ;;  %794 = vmatmul.mubr.msk.f32.vlgmr.msra.gmra.mrb[0].mxu1 %vm197_vm5, %v187_v25  ;;  %v188_v43 = vld [vmem:[#allocation3] sm:$0x3] }
  0x52   :  { %815 = vmatprep.mubr.msk.f32.mxu1 %vm1057_vm0, %v1058_v2  ;;  %857 = vmatpush3.bf16.msra.mxu1 %v856_v53  ;;  %v591_v25 = vld [vmem:[%s1348_s7] sm:$0xff] }
  0x53   :  { %858 = vmatprep.subr.bf16.mxu1 %v1056_v1 }
  0x54   :  { %854 = vmatpush3.bf16.msra.mxu0 %v853_v23 }
  0x55   :  { %861 = vmatprep.subr.bf16.mxu0 %v1056_v1  ;;  %v389_v0 = vld [vmem:[#allocation2 + $0x2] sm:$0x3] }
  0x56   :  { %860 = vmatpush3.bf16.msra.mxu1 %v859_v61  ;;  %v391_v6 = vld [vmem:[#allocation3 + $0x2] sm:$0x3] }
  0x57   :  { %867 = vmatprep.subr.bf16.mxu1 %v1056_v1 }
  0x59   :  { %816 = vmatmul.mubr.msk.f32.vlgmr.msra.gmra.mrb[2].mxu1 %vm197_vm5, %v389_v0 }
  0x5a   :  { %837 = vmatprep.mubr.msk.f32.mxu1 %vm1057_vm0, %v1058_v2 }
 0x122   :  { %v178_v26 = vpop.f32.mrb[0].mxu0 }
 0x123   :  { %v784_v27 = vpop.f32.mrb[1].mxu0  ;;  %805 = vmatmul.mubr.msk.f32.vlgmr.msra.gmra.mrb[2].mxu0 %vm197_vm5, %v178_v26  ;;  %v592_v26 = vld [vmem:[%s1348_s7 + $0x8] sm:$0xff] }
 0x124   :  { %826 = vmatprep.mubr.msk.f32.mxu0 %vm1057_vm0, %v1058_v2  ;;  %v267_v28 = vpop.f32.mrb[0].mxu1  ;;  %863 = vmatpush3.bf16.msra.mxu0 %v862_v57  ;;  %v593_v27 = vld [vmem:[%s1348_s7 + $0x10] sm:$0xff] }
 0x125   :  { %v795_v29 = vpop.f32.mrb[1].mxu1  ;;  %864 = vmatprep.subr.bf16.mxu0 %v1056_v1 }
 0x126   :  { %v594_v29 = vld [vmem:[%s1348_s7 + $0x18] sm:$0xff]  ;;  %s1063_s7 = smov [#allocation13]  }
 0x127   :  { %v871_v30 = vpack.c.bf16 %v594_v29, %v593_v27  ;;  %s702_s17 = sshll.u32 %s1063_s7, 4  ;;  %s703_s17 = int_to_ptr.vmem [resolvable:$true] %s702_s17 }
 0x128   :  { %866 = vmatpush3.bf16.msra.mxu0 %v865_v62  ;;  %s974_s18 = scalar_lea.vmem %s703_s17, 64  ;;  %p979_p0 = scmp.lt.s32.totalorder %s703_s17, %s703_s17 }
 0x129   :  { %p975_p13 = scmp.ne.s32.totalorder %s703_s17, %s974_s18  ;;  %p980_p1 = scmp.lt.s32.totalorder %s974_s18, %s974_s18 }
 0x12b   :  { %p981_p2 = por %p980_p1, %p979_p0 }
 0x12c   :  { %v471_v7 = vpop.f32.mrb[2].mxu1 }
 0x12d   :  { %v817_v8 = vpop.f32.mrb[3].mxu1  ;;  %p982_p3 = pnand %p981_p2, %p975_p13 }
 0x1f6   :  { %v340_v31 = vpop.f32.mrb[2].mxu0 }
 0x1f7   :  { %v341_v33 = vadd.f32 %v340_v31, %v267_v28  ;;  %v806_v34 = vpop.f32.mrb[3].mxu0  ;;  %v868_v28 = vpack.c.bf16 %v592_v26, %v591_v25 }
 0x1f9   :  { %v351_v37 = vadd.f32 %v739_v32, %v341_v33  ;;  %869 = vmatpush3.bf16.msra.mxu1 %v868_v28 }
 0x1fa   :  { %870 = vmatprep.subr.bf16.mxu1 %v1056_v1 }
 0x1fb   :  { %v352_v38 = vmul.f32 %v351_v37, %v1225_v36 }
 0x1fd   :  { %890 = vtanh.f32 %v352_v38  ;;  %872 = vmatpush3.bf16.msra.mxu1 %v871_v30 }
 0x207   :  { %v891_v39 = vpop.eup %890 }
 0x208   :  { %v354_v41 = vmul.f32 %v891_v39, %v1225_v36 }
 0x20a   :  { %v355_v42 = vadd.f32 %v354_v41, %v1228_v40 }
 0x20c   :  { %362 = vrot.lane.b32.xlu0 %v355_v42, %s1060_s21 }
 0x210   :  { %357 = vrot.lane.b32.xlu0 %v188_v43, %s1061_s22 }
 0x27e   :  { %v363_v44 = vpop.permute.xlu0 %362 }
 0x27f   :  { %v365_v45 = vmul.f32 %v363_v44, %v355_v42 }
 0x281   :  { %367 = vrot.lane.b32.xlu1 %v365_v45, %s1061_s22 }
 0x282   :  { %v358_v46 = vpop.permute.xlu0 %357 }
 0x283   :  { %v360_v47 = vmul.f32 %v358_v46, %v355_v42 }
 0x2f3   :  { %v368_v48 = vpop.permute.xlu1 %367 }
 0x2f4   :  { %v1235_v49 = vadd.f32 %v368_v48, %v360_v47 }
 0x2f6   :  { %892 = vtanh.f32 %v1235_v49 }
 0x300   :  { %v893_v63 = vpop.eup %892 }
 0x301   :  { %373 = vrot.lane.b32.xlu1 %v893_v63, %s1060_s21 }
 0x373   :  { %v374_v4 = vpop.permute.xlu1 %373 }
 0x374   :  { %v376_v5 = vmul.f32 %v374_v4, %v355_v42 }
 0x376   :  { %378 = vrot.lane.b32.xlu0 %v376_v5, %s1061_s22 }
 0x37a   :  { %561 = vrot.lane.b32.xlu0 %v391_v6, %s1061_s22 }
 0x3e8   :  { %v379_v9 = vpop.permute.xlu0 %378 }
 0x3e9   :  { %382 = vst.msk [vmem:[#allocation2] sm:$0x3] %vm84_vm4, %v379_v9  ;;  %827 = vmatmul.mubr.msk.f32.vlgmr.msra.gmra.mrb[4].mxu0 %vm197_vm5, %v379_v9 }
 0x3ec   :  { %v562_v21 = vpop.permute.xlu0 %561 }
 0x3f0   :  { %v679_v2 = vld [vmem:[#allocation2] sm:$0x3] }
 0x3f1   :  { %681 = vst.msk [vmem:[#allocation13] sm:$0x3] %vm84_vm4, %v679_v2 }
 0x4bc   :  { %v543_v10 = vpop.f32.mrb[4].mxu0 }
 0x4bd   :  { %v544_v12 = vadd.f32 %v543_v10, %v471_v7  ;;  %v828_v13 = vpop.f32.mrb[5].mxu0 }
 0x4bf   :  { %v555_v14 = vadd.f32 %v747_v11, %v544_v12 }
 0x4c1   :  { %v556_v15 = vmul.f32 %v555_v14, %v1225_v36 }
 0x4c3   :  { %894 = vtanh.f32 %v556_v15 }
 0x4cd   :  { %v895_v16 = vpop.eup %894 }
 0x4ce   :  { %v558_v17 = vmul.f32 %v895_v16, %v1225_v36 }
 0x4d0   :  { %v559_v18 = vadd.f32 %v558_v17, %v1228_v40 }
 0x4d2   :  { %566 = vrot.lane.b32.xlu1 %v559_v18, %s1060_s21  ;;  %v564_v22 = vmul.f32 %v562_v21, %v559_v18 }
 0x544   :  { %v567_v19 = vpop.permute.xlu1 %566 }
 0x545   :  { %v569_v20 = vmul.f32 %v567_v19, %v559_v18 }
 0x547   :  { %571 = vrot.lane.b32.xlu1 %v569_v20, %s1061_s22 }
 0x5b9   :  { %v572_v23 = vpop.permute.xlu1 %571 }
 0x5ba   :  { %v574_v24 = vadd.f32 %v572_v23, %v564_v22 }
 0x5bc   :  { %896 = vtanh.f32 %v574_v24 }
 0x5c6   :  { %v897_v31 = vpop.eup %896 }
 0x5c7   :  { %577 = vrot.lane.b32.xlu0 %v897_v31, %s1060_s21 }
 0x5cb   :  { %384 = vrot.lane.b32.xlu0 %v1235_v49, %s1062_s16 }
 0x639   :  { %v578_v32 = vpop.permute.xlu0 %577 }
 0x63a   :  { %v580_v33 = vmul.f32 %v578_v32, %v559_v18 }
 0x63c   :  { %582 = vrot.lane.b32.xlu1 %v580_v33, %s1061_s22 }
 0x63d   :  { %v385_v34 = vpop.permute.xlu0 %384 }
 0x63e   :  { %387 = vst.msk [vmem:[#allocation3] sm:$0x3] %vm84_vm4, %v385_v34 }
 0x640   :  { %587 = vrot.lane.b32.xlu1 %v574_v24, %s1062_s16 }
 0x645   :  { %v683_v35 = vld [vmem:[#allocation3] sm:$0x3] }
 0x646   :  { %685 = vst.msk [vmem:[#allocation15] sm:$0x3] %vm84_vm4, %v683_v35 }
 0x6ae   :  { %v583_v36 = vpop.permute.xlu1 %582 }
 0x6af   :  { %585 = vst.msk [vmem:[#allocation2 + $0x2] sm:$0x3] %vm84_vm4, %v583_v36  ;;  %838 = vmatmul.mubr.msk.f32.vlgmr.msra.gmra.mrb[4].mxu1 %vm197_vm5, %v583_v36 }
 0x6b2   :  { %v588_v1 = vpop.permute.xlu1 %587 }
 0x6b3   :  { %590 = vst.msk [vmem:[#allocation3 + $0x2] sm:$0x3] %vm84_vm4, %v588_v1 }
 0x6b6   :  { %v680_v37 = vld [vmem:[#allocation2 + $0x2] sm:$0x3] }
 0x6b7   :  { %682 = vst.msk [vmem:[#allocation13 + $0x2] sm:$0x3] %vm84_vm4, %v680_v37 }
 0x6ba   :  { %v684_v38 = vld [vmem:[#allocation3 + $0x2] sm:$0x3] }
 0x6bb   :  { %686 = vst.msk [vmem:[#allocation15 + $0x2] sm:$0x3] %vm84_vm4, %v684_v38 }
 0x6bc   :  { %985 = shalt.err (!%p982_p3)
}
 0x6bd   :  { %s986_s24 = scalar_lea.hbm %s1351_s10, 64 }
 0x6be   :  { %p987_p4 = scmp.ne.s32.totalorder %s1351_s10, %s986_s24  ;;  %p990_p5 = scmp.lt.u32.totalorder %s986_s24, %s1351_s10 }
 0x6c0   :  { %p992_p6 = pnand %p990_p5, %p987_p4 }
 0x6c2   :  { %995 = shalt.err (!%p992_p6)
}
 0x6c3   :  { %s1064_s25 = smov 2   ;;  %s1065_s27 = smov [#allocation15]  }
 0x6c4   :  { %708 = dma.vmem_to_hbm [thread:$0]  %s703_s17, 64, %s1351_s10, [#allocation14], %s1061_s22, %s1061_s22, %s1064_s25  }
 0x6c5   :  { %s714_s2 = sshll.u32 %s1065_s27, 4  ;;  %s715_s2 = int_to_ptr.vmem [resolvable:$true] %s714_s2 }
 0x6c6   :  { %s996_s4 = scalar_lea.vmem %s715_s2, 64  ;;  %p1001_p8 = scmp.lt.s32.totalorder %s715_s2, %s715_s2 }
 0x6c7   :  { %p997_p7 = scmp.ne.s32.totalorder %s715_s2, %s996_s4  ;;  %p1002_p9 = scmp.lt.s32.totalorder %s996_s4, %s996_s4 }
 0x6c9   :  { %p1003_p10 = por %p1002_p9, %p1001_p8 }
 0x6cb   :  { %p1004_p11 = pnand %p1003_p10, %p997_p7 }
 0x6cd   :  { %1007 = shalt.err (!%p1004_p11)
}
 0x6ce   :  { %s1008_s6 = scalar_lea.hbm %s1352_s11, 64 }
 0x6cf   :  { %p1009_p12 = scmp.ne.s32.totalorder %s1352_s11, %s1008_s6  ;;  %p1012_p13 = scmp.lt.u32.totalorder %s1008_s6, %s1352_s11 }
 0x6d1   :  { %p1014_p0 = pnand %p1012_p13, %p1009_p12 }
 0x6d3   :  { %1017 = shalt.err (!%p1014_p0)
}
 0x6d4   :  { %720 = dma.vmem_to_hbm [thread:$0]  %s715_s2, 64, %s1352_s11, [#allocation14], %s1061_s22, %s1061_s22, %s1064_s25   ;;  %v748_v39 = vld [vmem:[#allocation11] ss:$0 sm:$0xff]  ;;  %vm674_vm9 = vcmask 58368  }
 0x6d5   :  { %s1066_s15 = smov [#allocation12]  }
 0x6d6   :  { %s693_s0 = sshll.u32 %s1066_s15, 4  ;;  %s694_s0 = int_to_ptr.vmem [resolvable:$true] %s693_s0 }
 0x6d7   :  { %s1018_s16 = scalar_lea.vmem %s694_s0, 32  ;;  %p1023_p2 = scmp.lt.s32.totalorder %s694_s0, %s694_s0 }
 0x6d8   :  { %p1019_p1 = scmp.ne.s32.totalorder %s694_s0, %s1018_s16  ;;  %p1024_p3 = scmp.lt.s32.totalorder %s1018_s16, %s1018_s16 }
 0x6da   :  { %p1025_p4 = por %p1024_p3, %p1023_p2 }
 0x6dc   :  { %p1026_p5 = pnand %p1025_p4, %p1019_p1 }
 0x782   :  { %v670_v40 = vpop.f32.mrb[4].mxu1 }
 0x783   :  { %v671_v41 = vadd.f32 %v748_v39, %v670_v40  ;;  %v839_v42 = vpop.f32.mrb[5].mxu1 }
 0x785   :  { %675 = vst.msk [vmem:[#allocation12] sm:$0x3] %vm674_vm9, %v671_v41 }
 0x786   :  { %1029 = shalt.err (!%p1026_p5)
}
 0x787   :  { %s1030_s11 = scalar_lea.hbm %s1350_s9, 32 }
 0x788   :  { %p1031_p6 = scmp.ne.s32.totalorder %s1350_s9, %s1030_s11  ;;  %p1034_p7 = scmp.lt.u32.totalorder %s1030_s11, %s1350_s9 }
 0x78a   :  { %p1036_p8 = pnand %p1034_p7, %p1031_p6 }
 0x78c   :  { %1039 = shalt.err (!%p1036_p8)
}
 0x78d   :  { %696 = dma.vmem_to_hbm [thread:$0]  %s694_s0, 32, %s1350_s9, [#allocation8]  }
 0x78e   :  { %1046 = dma.done.wait [#allocation8], 32  }
 0x78f   :  { %1047 = vsyncadd [#allocation8], 4294967264 }
 0x790   :  { %1048 = dma.done.wait [#allocation14], 128  }
 0x791   :  { %1049 = vsyncadd [#allocation14], 4294967168 }
 0x792   :  { %730 = vsyncpa [#allocation7], 1 }
 0x793   :  { %731 = vsyncpa [#allocation10], 1 }
 0x794   :  { %732 = vsyncpa [#allocation8], 1 }
 0x795   :  { %733 = vsyncpa [#allocation14], 1 }

</bundles_post_ra>
